<compile_context>
chip_gen: v7x
topology: tpu7x:2x2x1
jax: 0.10.0
libtpu: 0.0.40
codegen_flags: <defaults>
</compile_context>

<pallas_src>
import numpy as np
import jax
import jax.numpy as jnp
from jax.experimental import pallas as pl
from jax.experimental.pallas import tpu as pltpu

HIDDEN = 32  # hidden width of the synthetic epsilon model


def cosine_beta_schedule(timesteps, s=0.008):
    steps = timesteps + 1
    x = np.linspace(0, steps, steps)
    ac = np.cos(((x / steps) + s) / (1 + s) * np.pi * 0.5) ** 2
    ac = ac / ac[0]
    betas = 1 - (ac[1:] / ac[:-1])
    return np.clip(betas, 0, 0.999).astype(np.float32)


# ---------------------------------------------------------------------------
# Fused Pallas kernel: the full reverse-diffusion loop (grid axis = timestep).
# ---------------------------------------------------------------------------
def fused_p_sample_loop_kernel(coef_ref, x0_ref, cond_ref, w1x_ref, w1c_ref,
                               bias_ref, w2_ref, b2_ref, noise_ref, out_ref,
                               x_state, cproj):
    s = pl.program_id(0)  # s = 0..T-1 in sampling order (t = T-1-s; tables pre-reversed)

    @pl.when(s == 0)
    def _init():
        x_state[...] = x0_ref[...]
        # cond projection is timestep-invariant: compute once, keep resident in VMEM.
        cproj[...] = jnp.dot(cond_ref[...], w1c_ref[...],
                             preferred_element_type=jnp.float32)

    x = x_state[...]

    # synthetic epsilon model (stands in for the injected `model(x, cond, t)`)
    h = jnp.dot(x, w1x_ref[...], preferred_element_type=jnp.float32)
    h = jnp.maximum(h + cproj[...] + bias_ref[0], 0.0)          # bias = b1 + temb[t]
    eps = jnp.dot(h, w2_ref[...], preferred_element_type=jnp.float32) + b2_ref[...]

    c_recip = coef_ref[s, 0]    # sqrt(1/alphas_cumprod[t])
    c_recipm1 = coef_ref[s, 1]  # sqrt(1/alphas_cumprod[t] - 1)
    pm1 = coef_ref[s, 2]        # posterior_mean_coef1[t]
    pm2 = coef_ref[s, 3]        # posterior_mean_coef2[t]
    std = coef_ref[s, 4]        # nonzero_mask * 0.5 * exp(0.5*log_var[t])  (all pre-folded)

    x_recon = c_recip * x - c_recipm1 * eps     # predict_epsilon=True
    # clip_denoised=False -> no clamp branch (module default path)
    mean = pm1 * x_recon + pm2 * x
    x_new = mean + std * noise_ref[0]

    x_state[...] = x_new
    out_ref[...] = x_new     # constant output index_map: stays in VMEM, written back once


def p_sample_loop_fused(coefs, x0, cond, w1x, w1c, bias_t, w2, b2, noise):
    T = coefs.shape[0]
    Bp, A = x0.shape
    D = cond.shape[1]
    H = w1x.shape[1]
    return pl.pallas_call(
        fused_p_sample_loop_kernel,
        out_shape=jax.ShapeDtypeStruct((Bp, A), jnp.float32),
        grid=(T,),
        in_specs=[
            pl.BlockSpec(memory_space=pltpu.MemorySpace.SMEM),  # (T, 8) per-step scalar table
            pl.BlockSpec((Bp, A), lambda s: (0, 0)),            # x0            (DMA once)
            pl.BlockSpec((Bp, D), lambda s: (0, 0)),            # cond (state)  (DMA once)
            pl.BlockSpec((A, H), lambda s: (0, 0)),             # W1x           (DMA once)
            pl.BlockSpec((D, H), lambda s: (0, 0)),             # W1c           (DMA once)
            pl.BlockSpec((1, 1, H), lambda s: (s, 0, 0)),       # b1 + temb[t]  (per step)
            pl.BlockSpec((H, A), lambda s: (0, 0)),             # W2            (DMA once)
            pl.BlockSpec((1, A), lambda s: (0, 0)),             # b2            (DMA once)
            pl.BlockSpec((1, Bp, A), lambda s: (s, 0, 0)),      # std-normal noise (per step)
        ],
        out_specs=pl.BlockSpec((Bp, A), lambda s: (0, 0)),
        scratch_shapes=[pltpu.VMEM((Bp, A), jnp.float32),       # resident x
                        pltpu.VMEM((Bp, H), jnp.float32)],      # resident cond @ W1c
        compiler_params=pltpu.CompilerParams(dimension_semantics=("arbitrary",)),
    )(coefs, x0, cond, w1x, w1c, bias_t, w2, b2, noise)


# ---------------------------------------------------------------------------
# Module glue (schedules, tables, conditioning)
# ---------------------------------------------------------------------------
class ActionGaussianDiffusionPallas:
    def __init__(self, horizon, observation_dim, action_dim, n_timesteps=16,
                 clip_denoised=False, predict_epsilon=True, hidden_dim=HIDDEN,
                 returns_condition=False, condition_guidance_w=0.1, key=None):
        self.horizon = horizon                      # not used on this forward path
        self.observation_dim = observation_dim
        self.action_dim = action_dim
        self.transition_dim = observation_dim + action_dim
        self.n_timesteps = int(n_timesteps)
        self.clip_denoised = clip_denoised
        self.predict_epsilon = predict_epsilon
        self.returns_condition = returns_condition
        self.condition_guidance_w = condition_guidance_w
        self.hidden_dim = hidden_dim
        # TODO(synk): returns_condition classifier-free-guidance blend
        # (eps_uncond + w*(eps_cond-eps_uncond)) is not kernelized; only the default
        # returns_condition=False path of p_mean_variance is implemented.

        betas = cosine_beta_schedule(self.n_timesteps)
        alphas = 1.0 - betas
        alphas_cumprod = np.cumprod(alphas, axis=0)
        alphas_cumprod_prev = np.concatenate([np.ones(1, np.float32), alphas_cumprod[:-1]])
        self.sqrt_recip_alphas_cumprod = np.sqrt(1.0 / alphas_cumprod).astype(np.float32)
        self.sqrt_recipm1_alphas_cumprod = np.sqrt(1.0 / alphas_cumprod - 1).astype(np.float32)
        posterior_variance = betas * (1.0 - alphas_cumprod_prev) / (1.0 - alphas_cumprod)
        self.posterior_variance = posterior_variance.astype(np.float32)
        self.posterior_log_variance_clipped = np.log(
            np.clip(posterior_variance, 1e-20, None)).astype(np.float32)
        self.posterior_mean_coef1 = (betas * np.sqrt(alphas_cumprod_prev)
                                     / (1.0 - alphas_cumprod)).astype(np.float32)
        self.posterior_mean_coef2 = ((1.0 - alphas_cumprod_prev) * np.sqrt(alphas)
                                     / (1.0 - alphas_cumprod)).astype(np.float32)

        # Deterministic synthetic epsilon-model parameters (stands in for injected `model`).
        key = jax.random.PRNGKey(0) if key is None else key
        k1, k2, k3, k4, k5 = jax.random.split(key, 5)
        A, D, H = action_dim, observation_dim, hidden_dim
        self.w1x = 0.1 * jax.random.normal(k1, (A, H), jnp.float32)
        self.w1c = 0.1 * jax.random.normal(k2, (D, H), jnp.float32)
        self.b1 = 0.1 * jax.random.normal(k3, (1, H), jnp.float32)
        self.w2 = 0.1 * jax.random.normal(k4, (H, A), jnp.float32)
        self.b2 = 0.1 * jax.random.normal(k5, (1, A), jnp.float32)

    def _time_embed_table(self):
        T, H = self.n_timesteps, self.hidden_dim
        half = H // 2
        freqs = np.exp(-np.log(10000.0) * np.arange(half) / max(half, 1))
        ang = np.arange(T)[:, None] * freqs[None, :]
        return np.concatenate([np.sin(ang), np.cos(ang)], axis=1).astype(np.float32)  # (T,H)

    def _loop_tables(self):
        """Per-step tables ordered in sampling order (grid step s=0 corresponds to t=T-1)."""
        T = self.n_timesteps
        ts = np.arange(T - 1, -1, -1)
        nonzero = (ts != 0).astype(np.float32)
        coefs = np.zeros((T, 8), np.float32)
        coefs[:, 0] = self.sqrt_recip_alphas_cumprod[ts]
        coefs[:, 1] = self.sqrt_recipm1_alphas_cumprod[ts]
        coefs[:, 2] = self.posterior_mean_coef1[ts]
        coefs[:, 3] = self.posterior_mean_coef2[ts]
        coefs[:, 4] = nonzero * 0.5 * np.exp(0.5 * self.posterior_log_variance_clipped[ts])
        temb = self._time_embed_table()[ts]                       # (T, H) in loop order
        bias_t = (jnp.asarray(temb) + self.b1)[:, None, :]        # (T, 1, H): b1 + temb folded
        return jnp.asarray(coefs), bias_t

    def p_sample_loop(self, shape, cond_state, key):
        B, A = shape
        T = self.n_timesteps
        Bp = max(8, ((B + 7) // 8) * 8)    # pad batch rows to a sublane multiple
        k_x0, k_noise = jax.random.split(key)
        x0 = 0.5 * jax.random.normal(k_x0, (B, A), jnp.float32)
        noise = jax.random.normal(k_noise, (T, B, A), jnp.float32)  # 0.5 & std folded in coefs

        x0_p = jnp.zeros((Bp, A), jnp.float32).at[:B].set(x0)
        cond_p = jnp.zeros((Bp, self.observation_dim), jnp.float32).at[:B].set(cond_state)
        noise_p = jnp.zeros((T, Bp, A), jnp.float32).at[:, :B].set(noise)

        coefs, bias_t = self._loop_tables()
        out = p_sample_loop_fused(coefs, x0_p, cond_p, self.w1x, self.w1c,
                                  bias_t, self.w2, self.b2, noise_p)
        return out[:B]

    def conditional_sample(self, cond, key, **kwargs):
        state = cond[0]                                # (B, observation_dim)
        batch_size = state.shape[0]
        shape = (batch_size, self.action_dim)          # x is actions only (matches reference)
        return self.p_sample_loop(shape, state, key)

    def forward(self, cond, key, *args, **kwargs):
        return self.conditional_sample(cond=cond, key=key)


# ---------------------------------------------------------------------------
if __name__ == "__main__":
    B, OBS, ACT, T = 2, 16, 4, 16
    key = jax.random.PRNGKey(0)
    k_cond, k_model, k_sample = jax.random.split(key, 3)

    cond = {0: jax.random.normal(k_cond, (B, OBS), jnp.float32)}
    module = ActionGaussianDiffusionPallas(
        horizon=8, observation_dim=OBS, action_dim=ACT,
        n_timesteps=T, hidden_dim=HIDDEN, key=k_model)

    out = module.forward(cond, key=k_sample)
    out = jax.block_until_ready(out)

    assert out.shape == (B, ACT), out.shape
    assert bool(jnp.all(jnp.isfinite(out)))
    print("KERNEL_OK")
</pallas_src>

<mosaic_0001>
module attributes {stable_mosaic.version = 11 : i64} {
  func.func @fused_p_sample_loop_kernel(%arg0: i32, %arg1: memref<16x8xf32, #tpu.memory_space<smem>>, %arg2: memref<8x4xf32, #tpu.memory_space<vmem>>, %arg3: memref<8x16xf32, #tpu.memory_space<vmem>>, %arg4: memref<4x32xf32, #tpu.memory_space<vmem>>, %arg5: memref<16x32xf32, #tpu.memory_space<vmem>>, %arg6: memref<1x1x32xf32, #tpu.memory_space<vmem>>, %arg7: memref<32x4xf32, #tpu.memory_space<vmem>>, %arg8: memref<1x4xf32, #tpu.memory_space<vmem>>, %arg9: memref<1x8x4xf32, #tpu.memory_space<vmem>>, %arg10: memref<8x4xf32, #tpu.memory_space<vmem>>, %arg11: memref<8x4xf32, #tpu.memory_space<vmem>>, %arg12: memref<8x32xf32, #tpu.memory_space<vmem>>) attributes {dimension_semantics = [#tpu.dimension_semantics<arbitrary>], iteration_bounds = array<i64: 16>, scalar_prefetch = 0 : i64, scratch_operands = 2 : i64, tpu.core_type = #tpu.core_type<tc>, window_params = [{transform_indices = @transform_0, window_bounds = array<i64: 16, 8>}, {pipeline_mode = #tpu.pipeline_mode<synchronous>, transform_indices = @transform_1, window_bounds = array<i64: 8, 4>}, {pipeline_mode = #tpu.pipeline_mode<synchronous>, transform_indices = @transform_2, window_bounds = array<i64: 8, 16>}, {pipeline_mode = #tpu.pipeline_mode<synchronous>, transform_indices = @transform_3, window_bounds = array<i64: 4, 32>}, {pipeline_mode = #tpu.pipeline_mode<synchronous>, transform_indices = @transform_4, window_bounds = array<i64: 16, 32>}, {transform_indices = @transform_5, window_bounds = array<i64: 1, 1, 32>}, {pipeline_mode = #tpu.pipeline_mode<synchronous>, transform_indices = @transform_6, window_bounds = array<i64: 32, 4>}, {pipeline_mode = #tpu.pipeline_mode<synchronous>, transform_indices = @transform_7, window_bounds = array<i64: 1, 4>}, {transform_indices = @transform_8, window_bounds = array<i64: 1, 8, 4>}, {pipeline_mode = #tpu.pipeline_mode<synchronous>, transform_indices = @transform_9, window_bounds = array<i64: 8, 4>}]} {
    %c0_i32 = arith.constant 0 : i32
    %0 = arith.cmpi eq, %arg0, %c0_i32 : i32
    %1 = arith.extui %0 : i1 to i32
    %c0_i32_0 = arith.constant 0 : i32
    %2 = arith.cmpi ne, %1, %c0_i32_0 : i32
    scf.if %2 {
      %c0_23 = arith.constant 0 : index
      %c0_24 = arith.constant 0 : index
      %46 = vector.load %arg2[%c0_23, %c0_24] : memref<8x4xf32, #tpu.memory_space<vmem>>, vector<8x4xf32>
      %c0_25 = arith.constant 0 : index
      %c0_26 = arith.constant 0 : index
      %47 = vector.load %arg11[%c0_25, %c0_26] : memref<8x4xf32, #tpu.memory_space<vmem>>, vector<8x4xf32>
      tpu.vector_store %arg11[%c0_25, %c0_26], %46 {strides = array<i32>} : memref<8x4xf32, #tpu.memory_space<vmem>>, vector<8x4xf32>,
      %c0_27 = arith.constant 0 : index
      %c0_28 = arith.constant 0 : index
      %48 = vector.load %arg3[%c0_27, %c0_28] : memref<8x16xf32, #tpu.memory_space<vmem>>, vector<8x16xf32>
      %c0_29 = arith.constant 0 : index
      %c0_30 = arith.constant 0 : index
      %49 = vector.load %arg5[%c0_29, %c0_30] : memref<16x32xf32, #tpu.memory_space<vmem>>, vector<16x32xf32>
      %cst_31 = arith.constant dense<0.000000e+00> : vector<8x32xf32>
      %50 = tpu.matmul %48, %49, %cst_31 {dimension_numbers = #tpu.dot_dimension_numbers<[1], [0], [0], [1], [0, 0, 1, 1], [], []>} : vector<8x16xf32>, vector<16x32xf32>, vector<8x32xf32> -> vector<8x32xf32>
      %c0_32 = arith.constant 0 : index
      %c0_33 = arith.constant 0 : index
      %51 = vector.load %arg12[%c0_32, %c0_33] : memref<8x32xf32, #tpu.memory_space<vmem>>, vector<8x32xf32>
      tpu.vector_store %arg12[%c0_32, %c0_33], %50 {strides = array<i32>} : memref<8x32xf32, #tpu.memory_space<vmem>>, vector<8x32xf32>,
    } else {
    }
    %c0 = arith.constant 0 : index
    %c0_1 = arith.constant 0 : index
    %3 = vector.load %arg11[%c0, %c0_1] : memref<8x4xf32, #tpu.memory_space<vmem>>, vector<8x4xf32>
    %c0_2 = arith.constant 0 : index
    %c0_3 = arith.constant 0 : index
    %4 = vector.load %arg4[%c0_2, %c0_3] : memref<4x32xf32, #tpu.memory_space<vmem>>, vector<4x32xf32>
    %cst = arith.constant dense<0.000000e+00> : vector<8x32xf32>
    %5 = tpu.matmul %3, %4, %cst {dimension_numbers = #tpu.dot_dimension_numbers<[1], [0], [0], [1], [0, 0, 1, 1], [], []>} : vector<8x4xf32>, vector<4x32xf32>, vector<8x32xf32> -> vector<8x32xf32>
    %c0_4 = arith.constant 0 : index
    %c0_5 = arith.constant 0 : index
    %6 = vector.load %arg12[%c0_4, %c0_5] : memref<8x32xf32, #tpu.memory_space<vmem>>, vector<8x32xf32>
    %7 = arith.addf %5, %6 : vector<8x32xf32>
    %c0_6 = arith.constant 0 : index
    %c0_7 = arith.constant 0 : index
    %c0_8 = arith.constant 0 : index
    %8 = vector.load %arg6[%c0_6, %c0_7, %c0_8] : memref<1x1x32xf32, #tpu.memory_space<vmem>>, vector<1x1x32xf32>
    %9 = vector.shape_cast %8 : vector<1x1x32xf32> to vector<1x32xf32>
    %10 = vector.broadcast %9 : vector<1x32xf32> to vector<8x32xf32>
    %11 = arith.addf %7, %10 : vector<8x32xf32>
    %cst_9 = arith.constant 0.000000e+00 : f32
    %12 = vector.broadcast %cst_9 : f32 to vector<8x32xf32>
    %13 = arith.maximumf %11, %12 : vector<8x32xf32>
    %c0_10 = arith.constant 0 : index
    %c0_11 = arith.constant 0 : index
    %14 = vector.load %arg7[%c0_10, %c0_11] : memref<32x4xf32, #tpu.memory_space<vmem>>, vector<32x4xf32>
    %cst_12 = arith.constant dense<0.000000e+00> : vector<8x4xf32>
    %15 = tpu.matmul %13, %14, %cst_12 {dimension_numbers = #tpu.dot_dimension_numbers<[1], [0], [0], [1], [0, 0, 1, 1], [], []>} : vector<8x32xf32>, vector<32x4xf32>, vector<8x4xf32> -> vector<8x4xf32>
    %c0_13 = arith.constant 0 : index
    %c0_14 = arith.constant 0 : index
    %16 = vector.load %arg8[%c0_13, %c0_14] : memref<1x4xf32, #tpu.memory_space<vmem>>, vector<1x4xf32>
    %17 = vector.broadcast %16 : vector<1x4xf32> to vector<8x4xf32>
    %18 = arith.addf %15, %17 : vector<8x4xf32>
    %19 = arith.index_cast %arg0 : i32 to index
    %c0_15 = arith.constant 0 : index
    %20 = memref.load %arg1[%19, %c0_15] : memref<16x8xf32, #tpu.memory_space<smem>>
    %21 = arith.index_cast %arg0 : i32 to index
    %c1 = arith.constant 1 : index
    %22 = memref.load %arg1[%21, %c1] : memref<16x8xf32, #tpu.memory_space<smem>>
    %23 = arith.index_cast %arg0 : i32 to index
    %c2 = arith.constant 2 : index
    %24 = memref.load %arg1[%23, %c2] : memref<16x8xf32, #tpu.memory_space<smem>>
    %25 = arith.index_cast %arg0 : i32 to index
    %c3 = arith.constant 3 : index
    %26 = memref.load %arg1[%25, %c3] : memref<16x8xf32, #tpu.memory_space<smem>>
    %27 = arith.index_cast %arg0 : i32 to index
    %c4 = arith.constant 4 : index
    %28 = memref.load %arg1[%27, %c4] : memref<16x8xf32, #tpu.memory_space<smem>>
    %29 = vector.broadcast %20 : f32 to vector<8x4xf32>
    %30 = arith.mulf %29, %3 : vector<8x4xf32>
    %31 = vector.broadcast %22 : f32 to vector<8x4xf32>
    %32 = arith.mulf %31, %18 : vector<8x4xf32>
    %33 = arith.subf %30, %32 : vector<8x4xf32>
    %34 = vector.broadcast %24 : f32 to vector<8x4xf32>
    %35 = arith.mulf %34, %33 : vector<8x4xf32>
    %36 = vector.broadcast %26 : f32 to vector<8x4xf32>
    %37 = arith.mulf %36, %3 : vector<8x4xf32>
    %38 = arith.addf %35, %37 : vector<8x4xf32>
    %c0_16 = arith.constant 0 : index
    %c0_17 = arith.constant 0 : index
    %c0_18 = arith.constant 0 : index
    %39 = vector.load %arg9[%c0_16, %c0_17, %c0_18] : memref<1x8x4xf32, #tpu.memory_space<vmem>>, vector<1x8x4xf32>
    %40 = vector.shape_cast %39 : vector<1x8x4xf32> to vector<8x4xf32>
    %41 = vector.broadcast %28 : f32 to vector<8x4xf32>
    %42 = arith.mulf %41, %40 : vector<8x4xf32>
    %43 = arith.addf %38, %42 : vector<8x4xf32>
    %c0_19 = arith.constant 0 : index
    %c0_20 = arith.constant 0 : index
    %44 = vector.load %arg11[%c0_19, %c0_20] : memref<8x4xf32, #tpu.memory_space<vmem>>, vector<8x4xf32>
    tpu.vector_store %arg11[%c0_19, %c0_20], %43 {strides = array<i32>} : memref<8x4xf32, #tpu.memory_space<vmem>>, vector<8x4xf32>,
    %c0_21 = arith.constant 0 : index
    %c0_22 = arith.constant 0 : index
    %45 = vector.load %arg10[%c0_21, %c0_22] : memref<8x4xf32, #tpu.memory_space<vmem>>, vector<8x4xf32>
    tpu.vector_store %arg10[%c0_21, %c0_22], %43 {strides = array<i32>} : memref<8x4xf32, #tpu.memory_space<vmem>>, vector<8x4xf32>,
    return
  }
  func.func @transform_0(%arg0: i32) -> (i32, i32) {
    %c0_i32 = arith.constant 0 : i32
    %c0_i32_0 = arith.constant 0 : i32
    %c0_i32_1 = arith.constant 0 : i32
    return %c0_i32, %c0_i32_0 : i32, i32
  }
  func.func @transform_1(%arg0: i32) -> (i32, i32) {
    %c0_i32 = arith.constant 0 : i32
    %c0_i32_0 = arith.constant 0 : i32
    %c0_i32_1 = arith.constant 0 : i32
    return %c0_i32, %c0_i32_0 : i32, i32
  }
  func.func @transform_2(%arg0: i32) -> (i32, i32) {
    %c0_i32 = arith.constant 0 : i32
    %c0_i32_0 = arith.constant 0 : i32
    %c0_i32_1 = arith.constant 0 : i32
    return %c0_i32, %c0_i32_0 : i32, i32
  }
  func.func @transform_3(%arg0: i32) -> (i32, i32) {
    %c0_i32 = arith.constant 0 : i32
    %c0_i32_0 = arith.constant 0 : i32
    %c0_i32_1 = arith.constant 0 : i32
    return %c0_i32, %c0_i32_0 : i32, i32
  }
  func.func @transform_4(%arg0: i32) -> (i32, i32) {
    %c0_i32 = arith.constant 0 : i32
    %c0_i32_0 = arith.constant 0 : i32
    %c0_i32_1 = arith.constant 0 : i32
    return %c0_i32, %c0_i32_0 : i32, i32
  }
  func.func @transform_5(%arg0: i32) -> (i32, i32, i32) {
    %c0_i32 = arith.constant 0 : i32
    %c0_i32_0 = arith.constant 0 : i32
    %c0_i32_1 = arith.constant 0 : i32
    return %arg0, %c0_i32, %c0_i32_0 : i32, i32, i32
  }
  func.func @transform_6(%arg0: i32) -> (i32, i32) {
    %c0_i32 = arith.constant 0 : i32
    %c0_i32_0 = arith.constant 0 : i32
    %c0_i32_1 = arith.constant 0 : i32
    return %c0_i32, %c0_i32_0 : i32, i32
  }
  func.func @transform_7(%arg0: i32) -> (i32, i32) {
    %c0_i32 = arith.constant 0 : i32
    %c0_i32_0 = arith.constant 0 : i32
    %c0_i32_1 = arith.constant 0 : i32
    return %c0_i32, %c0_i32_0 : i32, i32
  }
  func.func @transform_8(%arg0: i32) -> (i32, i32, i32) {
    %c0_i32 = arith.constant 0 : i32
    %c0_i32_0 = arith.constant 0 : i32
    %c0_i32_1 = arith.constant 0 : i32
    return %arg0, %c0_i32, %c0_i32_0 : i32, i32, i32
  }
  func.func @transform_9(%arg0: i32) -> (i32, i32) {
    %c0_i32 = arith.constant 0 : i32
    %c0_i32_0 = arith.constant 0 : i32
    %c0_i32_1 = arith.constant 0 : i32
    return %c0_i32, %c0_i32_0 : i32, i32
  }
}

</mosaic_0001>

<bundles_post_ra>
// kernel: tpu_custom_call.1
= control target key start
LH: loop header
LB: loop body
LE: loop exit
PB: predicated region body
PF: predicated region fallthrough
CT: control target
= control target key end

     0   :  { %14 = vsyncpa [#allocation5], 0  ;;  %s853_s30 = smov 0   ;;  %s952_s0 = inlined_call_operand.vmem [shape: f32[16,8], index: 0, kind: input, shape index: {}]   ;;  %s953_s1 = inlined_call_operand.vmem [shape: f32[8,4], index: 1, kind: input, shape index: {}]   ;;  %s954_s2 = inlined_call_operand.vmem [shape: f32[8,16], index: 2, kind: input, shape index: {}]   ;;  %s955_s3 = inlined_call_operand.vmem [shape: f32[4,32], index: 3, kind: input, shape index: {}]   ;;  %s956_s4 = inlined_call_operand.vmem [shape: f32[16,32], index: 4, kind: input, shape index: {}]   ;;  %s957_s5 = inlined_call_operand.vmem [shape: f32[16,1,32], index: 5, kind: input, shape index: {}]   ;;  %s958_s6 = inlined_call_operand.vmem [shape: f32[32,4], index: 6, kind: input, shape index: {}]   ;;  %s959_s7 = inlined_call_operand.vmem [shape: f32[1,4], index: 7, kind: input, shape index: {}]   ;;  %s960_s8 = inlined_call_operand.vmem [shape: f32[16,8,4], index: 8, kind: input, shape index: {}]   ;;  %s961_s9 = inlined_call_operand.vmem [shape: f32[8,4], index: 9, kind: output, shape index: {}]  }
   0x1 LB: > { %s859_s10 = sadd.s32 4294967295, %s792_s30   ;;  %p682_p0 = scmp.ge.s32.totalorder %s792_s30, 1  ;;  %s792_s30 = sphi %s853_s30, %s20_s30  }
   0x2   : > { %p245_p1 = scmp.lt.s32.totalorder %s792_s30, 17  ;;  %p683_p2 = scmp.ne.s32.totalorder %s859_s10, 0 }
   0x3   : > { %s257_s13 = sshll.u32 %s952_s0, 4  ;;  %p748_p4 = scmp.eq.s32.totalorder %s859_s10, 0  ;;  %s258_s13 = int_to_ptr.vmem [resolvable:$true] %s257_s13 }
   0x4   : > { %p867_p3 = pnand %p682_p0, %p245_p1  ;;  %s767_s16 = scalar_lea.vmem %s258_s13, 256 }
   0x5   : > { %p768_p7 = scmp.ne.s32.totalorder %s258_s13, %s767_s16  ;;  %p775_p11 = scmp.lt.s32.totalorder %s258_s13, %s258_s13 }
   0x6   : > { %p744_p5 = pneg %p867_p3  ;;  %p776_p12 = scmp.lt.s32.totalorder %s767_s16, %s767_s16 }
   0x8   : > { %p876_p6 = pnand %p748_p4, %p744_p5  ;;  %p777_p13 = por %p776_p12, %p775_p11 }
   0xa   : > { %p769_p8 = pneg %p876_p6 }
   0xc   : > { %p770_p9 = pnand %p769_p8, %p768_p7 }
   0xe   : > { %p771_p10 = pneg %p770_p9 }
  0x10   : > { %p778_p0 = pnand %p777_p13, %p771_p10 }
  0x12   : > { %781 = shalt.err (!%p778_p0)
}
  0x13   : > { %s794_s17 = smov [#allocation4]   ;;  %s795_s18 = smov 128  }
  0x14   : > { %s796_s19 = smov 8   ;;  %304 = sbr.rel (%p867_p3) target bundleno = 697 (0x2b9), region = 56 }
  0x15   : > { %747 = dma.vmem_to_smem (!%p876_p6), %s258_s13, 256, %s794_s17, [#allocation5], %s795_s18, %s795_s18, %s796_s19  }
  0x1b   : > { %787 = dma.done.wait (%p748_p4), [#allocation5], 256  }
  0x1c   : > { %789 = vsyncadd (%p748_p4), [#allocation5], 4294967040 }
  0x1d   : > { %310 = sfence }
  0x1e   : > { %p338_p1 = scmp.lt.s32.totalorder %s859_s10, 15  ;;  %348 = sbr.rel (%p683_p2) target bundleno = 251 (0xfb), region = 64  ;;  %v349_v0 = vld [vmem:[%s953_s1] sm:$0xff] (!%p683_p2)  ;;  %vm350_vm0 = vcmask (!%p683_p2), 31744   ;;  %v354_v2 = vld [vmem:[%s956_s4 + $0x8] sm:$0xff] (!%p683_p2)  ;;  %v797_v3 = vmov (!%p683_p2), 0.0|0.0  }
  0x1f   : > { %v353_v1 = vld [vmem:[%s956_s4] sm:$0xff] (!%p683_p2)  ;;  %351 = vst.msk [vmem:[#allocation2] sm:$0xff] (!%p683_p2), %vm350_vm0, %v349_v0  ;;  %731 = vmatprep.subr.bf16.mxu0 (!%p683_p2), %v797_v3  ;;  %vm798_vm1 = vmmov (!%p683_p2), 0   ;;  %v799_v5 = vmov (!%p683_p2), 0.0   ;;  %vm355_vm2 = vcmask (!%p683_p2), 130048   ;;  %vm429_vm3 = vcmask (!%p683_p2), 261120  }
  0x20   : > { %s892_s20 = scalar_select %p338_p1, %s859_s10, 15 }
  0x21   : > { %v732_v4 = vpack.c.bf16 (!%p683_p2), %v354_v2, %v353_v1  ;;  %712 = vmatprep.mubr.msk.f32.mxu0 (!%p683_p2), %vm798_vm1, %v799_v5  ;;  %v352_v6 = vld [vmem:[%s954_s2] sm:$0xff] (!%p683_p2) }
  0x22   : > { %s340_s23 = scalar_lea.vmem %s957_s5, %s892_s20  ;;  %s687_s24 = sshll.u32 %s892_s20, 3 }
  0x23   : > { %s902_s27 = scalar_lea.vmem %s960_s8, %s687_s24  ;;  %733 = vmatpush3.bf16.msra.mxu0 (!%p683_p2), %v732_v4 }
  0x26   : > { %713 = vmatmul.mubr.msk.f32.vlgmr.msra.gmra.mrb[0].mxu0 %vm355_vm2, %v352_v6 }
  0xf9   : > { %v425_v7 = vpop.f32.mrb[0].mxu0 }
  0xfa   : > { %430 = vst.msk [vmem:[#allocation3] sm:$0xff] %vm429_vm3, %v425_v7  ;;  %v714_v8 = vpop.f32.mrb[1].mxu0 }
  0xfb PF: > { %v432_v9 = vld [vmem:[%s955_s3] sm:$0xf]  ;;  %vm438_vm4 = vcmask 1043456   ;;  %v800_v11 = vmov 0.0   ;;  %vm801_vm5 = vmmov 0   ;;  %vm434_vm6 = vcmask 31744  }
  0xfc   : > { %v431_v10 = vld [vmem:[#allocation2] sm:$0xff]  ;;  %715 = vmatprep.subr.mxu0 %v800_v11  ;;  %717 = vmatprep.mubr.msk.f32.mxu0 %vm801_vm5, %v800_v11  ;;  %v802_v12 = vmov 0.0|0.0   ;;  %v522_v14 = vld [vmem:[%s958_s6 + $0x8] sm:$0xff]  ;;  %v523_v16 = vld [vmem:[%s958_s6 + $0x10] sm:$0xff]  ;;  %vm532_vm7 = vcmask 261120   ;;  %s695_s13 = sshll.u32 %s859_s10, 7 }
  0xfd   : > { %716 = vmatpush3.msk.msra.mxu0 %vm438_vm4, %v432_v9  ;;  %734 = vmatprep.subr.bf16.mxu1 %v802_v12  ;;  %v521_v13 = vld [vmem:[%s958_s6] sm:$0xff]  ;;  %v524_v17 = vld [vmem:[%s958_s6 + $0x18] sm:$0xff]  ;;  %s608_s14 = sadd.s32 1, %s695_s13  ;;  %s607_s15 = sld [smem:[#allocation4 + %s695_s13]] }
  0xfe   : > { %718 = vmatmul.mubr.msk.f32.vlgmr.msra.gmra.mrb[0].mxu0 %vm434_vm6, %v431_v10  ;;  %728 = vmatprep.mubr.msk.f32.mxu1 %vm801_vm5, %v800_v11  ;;  %v735_v15 = vpack.c.bf16 %v522_v14, %v521_v13  ;;  %v738_v18 = vpack.c.bf16 %v524_v17, %v523_v16  ;;  %v692_v21 = vld [vmem:[%s340_s23] ss:$0 sm:$0xff]  ;;  %s612_s16 = sadd.s32 3, %s695_s13  ;;  %s609_s17 = sld [smem:[#allocation4 + %s608_s14]] }
  0xff   : > { %s610_s18 = sadd.s32 2, %s695_s13  ;;  %s614_s19 = sadd.s32 4, %s695_s13  ;;  %v693_v26 = vld [vmem:[%s959_s7] ss:$0 sm:$0xff] }
 0x100   : > { %736 = vmatpush3.bf16.msra.mxu1 %v735_v15  ;;  %s613_s21 = sld [smem:[#allocation4 + %s612_s16]]  ;;  %v626_v36 = vld [vmem:[%s902_s27] sm:$0xff] }
 0x101   : > { %737 = vmatprep.subr.bf16.mxu1 %v802_v12  ;;  %v433_v19 = vld [vmem:[#allocation3] sm:$0xff]  ;;  %s611_s22 = sld [smem:[#allocation4 + %s610_s18]] }
 0x102   : > { %s615_s24 = sld [smem:[#allocation4 + %s614_s19]] }
 0x103   : > { %v616_v27 = vstv %s607_s15 }
 0x104   : > { %739 = vmatpush3.bf16.msra.mxu1 %v738_v18  ;;  %v618_v29 = vstv %s609_s17  ;;  %v617_v31 = vmul.f32 %v616_v27, %v431_v10 }
 0x106   : > { %v623_v33 = vstv %s613_s21 }
 0x107   : > { %v621_v35 = vstv %s611_s22  ;;  %v624_v38 = vmul.f32 %v623_v33, %v431_v10 }
 0x108   : > { %v627_v37 = vstv %s615_s24 }
 0x109   : > { %v628_v41 = vmul.f32 %v627_v37, %v626_v36 }
 0x1d1   : > { %v508_v20 = vpop.f32.mrb[0].mxu0 }
 0x1d2   : > { %v509_v22 = vadd.f32 %v508_v20, %v433_v19  ;;  %v719_v23 = vpop.f32.mrb[1].mxu0 }
 0x1d4   : > { %v519_v24 = vadd.f32 %v692_v21, %v509_v22 }
 0x1d6   : > { %v520_v25 = vmax.f32 %v519_v24, 0.0 }
 0x1d8   : > { %729 = vmatmul.mubr.msk.f32.vlgmr.msra.gmra.mrb[0].mxu1 %vm532_vm7, %v520_v25 }
 0x2ab   : > { %v602_v28 = vpop.f32.mrb[0].mxu1 }
 0x2ac   : > { %v603_v30 = vadd.f32 %v693_v26, %v602_v28  ;;  %v730_v32 = vpop.f32.mrb[1].mxu1 }
 0x2ae   : > { %v619_v34 = vmul.f32 %v618_v29, %v603_v30 }
 0x2b0   : > { %v620_v39 = vsub.f32 %v617_v31, %v619_v34 }
 0x2b2   : > { %v622_v40 = vmul.f32 %v621_v35, %v620_v39 }
 0x2b4   : > { %v625_v42 = vadd.f32 %v624_v38, %v622_v40 }
 0x2b6   : > { %v629_v43 = vadd.f32 %v628_v41, %v625_v42 }
 0x2b8   : > { %630 = vst.msk [vmem:[#allocation2] sm:$0xff] %vm434_vm6, %v629_v43  ;;  %631 = vst.msk [vmem:[%s961_s9] sm:$0xff] %vm434_vm6, %v629_v43 }
 0x2b9 PF: > { %s20_s30 = sadd.s32 1, %s792_s30  }
 0x2ba   : > { %p17_p2 = scmp.ge.s32.totalorder %s20_s30, 18  }
 0x2bc   :  { %19 = sbr.rel (!%p17_p2) target bundleno = 1 (0x1), region = 94 }
 0x2c3   :  { %643 = vsyncpa [#allocation5], 1 }
 0x2c4   :  { %645 = vsyncpa [#allocation5 + $0x1], 1 }

</bundles_post_ra>
